<compile_context>
chip_gen: v5e
topology: v5e:2x2
jax: 0.10.0
libtpu: 0.0.40
codegen_flags: <defaults>
</compile_context>

<pallas_src>
import functools

import jax
import jax.numpy as jnp
from jax.experimental import pallas as pl
from jax.experimental.pallas import tpu as pltpu


LANE = 128          # lane padding for the fused head matmul (MXU-friendly)
SPLIT_MIN = 2048    # split a single-tile batch in two once it has >= this many rows


def _round_up(x, m):
    return ((x + m - 1) // m) * m


def prepare_params(raw):
    """Fuse the mean (H2, A) and log_std (H2, 1) heads into ONE lane-padded
    (H2, LANE) weight/bias.  Call once (outside the RL inner loop) and reuse."""
    A = raw["wm"].shape[1]
    assert A + 1 <= LANE, "fused head assumes action_dim + 1 <= 128"
    H2 = raw["w2"].shape[1]
    wh = (jnp.zeros((H2, LANE), jnp.float32)
          .at[:, :A].set(raw["wm"])
          .at[:, A:A + 1].set(raw["ws"]))
    bh = (jnp.zeros((1, LANE), jnp.float32)
          .at[:, :A].set(raw["bm"])
          .at[:, A:A + 1].set(raw["bs"]))
    return dict(w1=raw["w1"], b1=raw["b1"], w2=raw["w2"], b2=raw["b2"],
                wh=wh, bh=bh)


def gaussian_policy_kernel(
    obs_ref,          # (TB, obs_dim)
    w1_ref, b1_ref,   # (obs_dim, H1), (1, H1)
    w2_ref, b2_ref,   # (H1, H2),      (1, H2)
    wh_ref, bh_ref,   # (H2, LANE),    (1, LANE)   fused lane-padded head
    out_ref,          # (A+1, TB)      rows [0:A] = mean^T, row [A] = log_std^T
    *,
    action_dim,
    clip_lo,
    clip_hi,
):
    obs = obs_ref[...]

    # base_net: Linear -> ReLU -> Linear -> ReLU
    h1 = jnp.dot(obs, w1_ref[...], preferred_element_type=jnp.float32) + b1_ref[...]
    h1 = jnp.maximum(h1, 0.0)
    h2 = jnp.dot(h1, w2_ref[...], preferred_element_type=jnp.float32) + b2_ref[...]
    h2 = jnp.maximum(h2, 0.0)

    # Fused head: one MXU pass produces [mean | log_std | zero padding]  (TB, LANE).
    head = jnp.dot(h2, wh_ref[...], preferred_element_type=jnp.float32) + bh_ref[...]

    # Transpose in-VMEM (XLU) and keep only the useful rows -> lane-dense (A+1, TB)
    # output: unmasked stores, contiguous DMA, ~42x fewer HBM bytes than (TB, 128).
    head_t = head.T                            # (LANE, TB)
    useful = head_t[:action_dim + 1, :]        # (A+1, TB)

    # Hardtanh clamp applies ONLY to the mean rows (the module's second Hardtanh
    # with identical bounds is idempotent); log_std row is passed through.
    row = jax.lax.broadcasted_iota(jnp.int32, useful.shape, 0)
    clamped = jnp.clip(useful, clip_lo, clip_hi)
    out_ref[...] = jnp.where(row < action_dim, clamped, useful).astype(out_ref.dtype)


def gaussian_policy_forward(obs, params, action_dim, *, tile_b=4096,
                            clip_lo=-20.0, clip_hi=20.0):
    """params must come from prepare_params().  Returns (mean (B,A), log_std (B,1))."""
    B, obs_dim = obs.shape
    H1 = params["w1"].shape[1]
    H2 = params["w2"].shape[1]
    A = action_dim
    assert params["wh"].shape == (H2, LANE)

    # --- Batch tiling -------------------------------------------------------
    # The output's last (lane) dim is the batch tile, so multi-step tiles must be
    # a multiple of 128; a single-step tile only needs sublane (8) alignment.
    B8 = _round_up(B, 8)
    if B8 <= tile_b:
        if B8 >= SPLIT_MIN:
            # Enough work to give both v7x TensorCores a tile (grid >= 2 steps).
            TB = _round_up(pl.cdiv(B8, 2), 128)
        else:
            TB = B8
    else:
        TB = _round_up(min(tile_b, B8), 128)
    B_pad = _round_up(B, TB)
    if B_pad != B:
        # Padded rows compute ReLU(bias)-driven garbage; they are sliced off below.
        obs = jnp.pad(obs, ((0, B_pad - B), (0, 0)))
    grid = (B_pad // TB,)

    in_specs = [
        pl.BlockSpec((TB, obs_dim), lambda i: (i, 0)),   # obs streams per batch tile
        pl.BlockSpec((obs_dim, H1), lambda i: (0, 0)),   # weights/biases stay resident
        pl.BlockSpec((1, H1),       lambda i: (0, 0)),
        pl.BlockSpec((H1, H2),      lambda i: (0, 0)),
        pl.BlockSpec((1, H2),       lambda i: (0, 0)),
        pl.BlockSpec((H2, LANE),    lambda i: (0, 0)),
        pl.BlockSpec((1, LANE),     lambda i: (0, 0)),
    ]
    out_specs = pl.BlockSpec((A + 1, TB), lambda i: (0, i))
    out_shape = jax.ShapeDtypeStruct((A + 1, B_pad), jnp.float32)

    flops = 2 * B_pad * (obs_dim * H1 + H1 * H2 + H2 * LANE)
    bytes_accessed = 4 * (B_pad * obs_dim
                          + obs_dim * H1 + H1
                          + H1 * H2 + H2
                          + H2 * LANE + LANE
                          + (A + 1) * B_pad)
    cost = pl.CostEstimate(flops=flops, transcendentals=0,
                           bytes_accessed=bytes_accessed)

    kernel = functools.partial(gaussian_policy_kernel,
                               action_dim=A, clip_lo=clip_lo, clip_hi=clip_hi)

    out = pl.pallas_call(
        kernel,
        grid=grid,
        in_specs=in_specs,
        out_specs=out_specs,
        out_shape=out_shape,
        compiler_params=pltpu.CompilerParams(
            dimension_semantics=("parallel",),
            vmem_limit_bytes=32 * 1024 * 1024),  # headroom above v5e's 16 MiB default
        cost_estimate=cost,
    )(obs, params["w1"], params["b1"], params["w2"], params["b2"],
      params["wh"], params["bh"])

    # Slim (A+1, B_pad) slab -> batch-major views; only ~12 B/row, so these
    # wrapper slices/transposes are nearly free (unlike the old (B,128) slab).
    mean = out[:A, :B].T
    log_std = out[A:A + 1, :B].T
    return mean, log_std


def init_params(key, obs_dim, action_dim, h1=64, h2=64):
    """Deterministic init mimicking PyTorch nn.Linear default (U[-1/sqrt(fan_in), +])."""
    def linear(k, fan_in, fan_out):
        kw, kb = jax.random.split(k)
        bound = 1.0 / jnp.sqrt(jnp.float32(fan_in))
        w = jax.random.uniform(kw, (fan_in, fan_out), jnp.float32, -bound, bound)
        b = jax.random.uniform(kb, (1, fan_out), jnp.float32, -bound, bound)
        return w, b

    k1, k2, k3, k4 = jax.random.split(key, 4)
    w1, b1 = linear(k1, obs_dim, h1)
    w2, b2 = linear(k2, h1, h2)
    wm, bm = linear(k3, h2, action_dim)
    ws, bs = linear(k4, h2, 1)
    return dict(w1=w1, b1=b1, w2=w2, b2=b2, wm=wm, bm=bm, ws=ws, bs=bs)


if __name__ == "__main__":
    key = jax.random.PRNGKey(0)
    k_obs, k_params = jax.random.split(key)

    batch, obs_dim, action_dim = 8, 16, 2
    obs = jax.random.normal(k_obs, (batch, obs_dim), jnp.float32)
    raw_params = init_params(k_params, obs_dim, action_dim)
    params = prepare_params(raw_params)   # head fusion done once, outside the hot path

    mean, log_std = gaussian_policy_forward(obs, params, action_dim)
    jax.block_until_ready((mean, log_std))

    # Reference check in plain JAX (matches the PyTorch module semantics).
    h = jnp.maximum(obs @ raw_params["w1"] + raw_params["b1"], 0.0)
    h = jnp.maximum(h @ raw_params["w2"] + raw_params["b2"], 0.0)
    mean_ref = jnp.clip(h @ raw_params["wm"] + raw_params["bm"], -20.0, 20.0)
    mean_ref = jnp.clip(mean_ref, -20.0, 20.0)  # second Hardtanh (idempotent)
    log_std_ref = h @ raw_params["ws"] + raw_params["bs"]

    assert mean.shape == (batch, action_dim) and log_std.shape == (batch, 1)
    assert jnp.allclose(mean, mean_ref, atol=1e-5), "mean mismatch"
    assert jnp.allclose(log_std, log_std_ref, atol=1e-5), "log_std mismatch"

    # TODO(synk): sample/log_probs/entropy (td.MultivariateNormal) are not part of
    # forward(); they remain plain-JAX on the consumer side.
    print("KERNEL_OK")
</pallas_src>

<mosaic_0001>
module attributes {stable_mosaic.version = 11 : i64} {
  func.func @gaussian_policy_kernel(%arg0: i32, %arg1: memref<8x16xf32, #tpu.memory_space<vmem>>, %arg2: memref<16x64xf32, #tpu.memory_space<vmem>>, %arg3: memref<1x64xf32, #tpu.memory_space<vmem>>, %arg4: memref<64x64xf32, #tpu.memory_space<vmem>>, %arg5: memref<1x64xf32, #tpu.memory_space<vmem>>, %arg6: memref<64x128xf32, #tpu.memory_space<vmem>>, %arg7: memref<1x128xf32, #tpu.memory_space<vmem>>, %arg8: memref<3x8xf32, #tpu.memory_space<vmem>>) attributes {dimension_semantics = [#tpu.dimension_semantics<parallel>], iteration_bounds = array<i64: 1>, scalar_prefetch = 0 : i64, scratch_operands = 0 : i64, tpu.core_type = #tpu.core_type<tc>, window_params = [{transform_indices = @transform_0, window_bounds = array<i64: 8, 16>}, {pipeline_mode = #tpu.pipeline_mode<synchronous>, transform_indices = @transform_1, window_bounds = array<i64: 16, 64>}, {pipeline_mode = #tpu.pipeline_mode<synchronous>, transform_indices = @transform_2, window_bounds = array<i64: 1, 64>}, {pipeline_mode = #tpu.pipeline_mode<synchronous>, transform_indices = @transform_3, window_bounds = array<i64: 64, 64>}, {pipeline_mode = #tpu.pipeline_mode<synchronous>, transform_indices = @transform_4, window_bounds = array<i64: 1, 64>}, {pipeline_mode = #tpu.pipeline_mode<synchronous>, transform_indices = @transform_5, window_bounds = array<i64: 64, 128>}, {pipeline_mode = #tpu.pipeline_mode<synchronous>, transform_indices = @transform_6, window_bounds = array<i64: 1, 128>}, {transform_indices = @transform_7, window_bounds = array<i64: 3, 8>}]} {
    %c0 = arith.constant 0 : index
    %c0_0 = arith.constant 0 : index
    %0 = vector.load %arg1[%c0, %c0_0] : memref<8x16xf32, #tpu.memory_space<vmem>>, vector<8x16xf32>
    %c0_1 = arith.constant 0 : index
    %c0_2 = arith.constant 0 : index
    %1 = vector.load %arg2[%c0_1, %c0_2] : memref<16x64xf32, #tpu.memory_space<vmem>>, vector<16x64xf32>
    %cst = arith.constant dense<0.000000e+00> : vector<8x64xf32>
    %2 = tpu.matmul %0, %1, %cst {dimension_numbers = #tpu.dot_dimension_numbers<[1], [0], [0], [1], [0, 0, 1, 1], [], []>} : vector<8x16xf32>, vector<16x64xf32>, vector<8x64xf32> -> vector<8x64xf32>
    %c0_3 = arith.constant 0 : index
    %c0_4 = arith.constant 0 : index
    %3 = vector.load %arg3[%c0_3, %c0_4] : memref<1x64xf32, #tpu.memory_space<vmem>>, vector<1x64xf32>
    %4 = vector.broadcast %3 : vector<1x64xf32> to vector<8x64xf32>
    %5 = arith.addf %2, %4 : vector<8x64xf32>
    %cst_5 = arith.constant 0.000000e+00 : f32
    %6 = vector.broadcast %cst_5 : f32 to vector<8x64xf32>
    %7 = arith.maximumf %5, %6 : vector<8x64xf32>
    %c0_6 = arith.constant 0 : index
    %c0_7 = arith.constant 0 : index
    %8 = vector.load %arg4[%c0_6, %c0_7] : memref<64x64xf32, #tpu.memory_space<vmem>>, vector<64x64xf32>
    %cst_8 = arith.constant dense<0.000000e+00> : vector<8x64xf32>
    %9 = tpu.matmul %7, %8, %cst_8 {dimension_numbers = #tpu.dot_dimension_numbers<[1], [0], [0], [1], [0, 0, 1, 1], [], []>} : vector<8x64xf32>, vector<64x64xf32>, vector<8x64xf32> -> vector<8x64xf32>
    %c0_9 = arith.constant 0 : index
    %c0_10 = arith.constant 0 : index
    %10 = vector.load %arg5[%c0_9, %c0_10] : memref<1x64xf32, #tpu.memory_space<vmem>>, vector<1x64xf32>
    %11 = vector.broadcast %10 : vector<1x64xf32> to vector<8x64xf32>
    %12 = arith.addf %9, %11 : vector<8x64xf32>
    %cst_11 = arith.constant 0.000000e+00 : f32
    %13 = vector.broadcast %cst_11 : f32 to vector<8x64xf32>
    %14 = arith.maximumf %12, %13 : vector<8x64xf32>
    %c0_12 = arith.constant 0 : index
    %c0_13 = arith.constant 0 : index
    %15 = vector.load %arg6[%c0_12, %c0_13] : memref<64x128xf32, #tpu.memory_space<vmem>>, vector<64x128xf32>
    %cst_14 = arith.constant dense<0.000000e+00> : vector<8x128xf32>
    %16 = tpu.matmul %14, %15, %cst_14 {dimension_numbers = #tpu.dot_dimension_numbers<[1], [0], [0], [1], [0, 0, 1, 1], [], []>} : vector<8x64xf32>, vector<64x128xf32>, vector<8x128xf32> -> vector<8x128xf32>
    %c0_15 = arith.constant 0 : index
    %c0_16 = arith.constant 0 : index
    %17 = vector.load %arg7[%c0_15, %c0_16] : memref<1x128xf32, #tpu.memory_space<vmem>>, vector<1x128xf32>
    %18 = vector.broadcast %17 : vector<1x128xf32> to vector<8x128xf32>
    %19 = arith.addf %16, %18 : vector<8x128xf32>
    %20 = tpu.transpose %19, [1, 0] : vector<8x128xf32> -> vector<128x8xf32>
    %21 = vector.extract_strided_slice %20 {offsets = [0, 0], sizes = [3, 8], strides = [1, 1]} : vector<128x8xf32> to vector<3x8xf32>
    %22 = tpu.iota {dimensions = array<i32: 0>} : vector<3x8xi32>
    %cst_17 = arith.constant -2.000000e+01 : f32
    %cst_18 = arith.constant 2.000000e+01 : f32
    %23 = vector.broadcast %cst_17 : f32 to vector<3x8xf32>
    %24 = arith.maximumf %23, %21 : vector<3x8xf32>
    %25 = vector.broadcast %cst_18 : f32 to vector<3x8xf32>
    %26 = arith.minimumf %25, %24 : vector<3x8xf32>
    %c2_i32 = arith.constant 2 : i32
    %27 = vector.broadcast %c2_i32 : i32 to vector<3x8xi32>
    %28 = arith.cmpi slt, %22, %27 : vector<3x8xi32>
    %29 = arith.select %28, %26, %21 : vector<3x8xi1>, vector<3x8xf32>
    %c0_19 = arith.constant 0 : index
    %c0_20 = arith.constant 0 : index
    %30 = vector.load %arg8[%c0_19, %c0_20] : memref<3x8xf32, #tpu.memory_space<vmem>>, vector<3x8xf32>
    tpu.vector_store %arg8[%c0_19, %c0_20], %29 {strides = array<i32>} : memref<3x8xf32, #tpu.memory_space<vmem>>, vector<3x8xf32>,
    return
  }
  func.func @transform_0(%arg0: i32) -> (i32, i32) {
    %c0_i32 = arith.constant 0 : i32
    %c0_i32_0 = arith.constant 0 : i32
    return %arg0, %c0_i32 : i32, i32
  }
  func.func @transform_1(%arg0: i32) -> (i32, i32) {
    %c0_i32 = arith.constant 0 : i32
    %c0_i32_0 = arith.constant 0 : i32
    %c0_i32_1 = arith.constant 0 : i32
    return %c0_i32, %c0_i32_0 : i32, i32
  }
  func.func @transform_2(%arg0: i32) -> (i32, i32) {
    %c0_i32 = arith.constant 0 : i32
    %c0_i32_0 = arith.constant 0 : i32
    %c0_i32_1 = arith.constant 0 : i32
    return %c0_i32, %c0_i32_0 : i32, i32
  }
  func.func @transform_3(%arg0: i32) -> (i32, i32) {
    %c0_i32 = arith.constant 0 : i32
    %c0_i32_0 = arith.constant 0 : i32
    %c0_i32_1 = arith.constant 0 : i32
    return %c0_i32, %c0_i32_0 : i32, i32
  }
  func.func @transform_4(%arg0: i32) -> (i32, i32) {
    %c0_i32 = arith.constant 0 : i32
    %c0_i32_0 = arith.constant 0 : i32
    %c0_i32_1 = arith.constant 0 : i32
    return %c0_i32, %c0_i32_0 : i32, i32
  }
  func.func @transform_5(%arg0: i32) -> (i32, i32) {
    %c0_i32 = arith.constant 0 : i32
    %c0_i32_0 = arith.constant 0 : i32
    %c0_i32_1 = arith.constant 0 : i32
    return %c0_i32, %c0_i32_0 : i32, i32
  }
  func.func @transform_6(%arg0: i32) -> (i32, i32) {
    %c0_i32 = arith.constant 0 : i32
    %c0_i32_0 = arith.constant 0 : i32
    %c0_i32_1 = arith.constant 0 : i32
    return %c0_i32, %c0_i32_0 : i32, i32
  }
  func.func @transform_7(%arg0: i32) -> (i32, i32) {
    %c0_i32 = arith.constant 0 : i32
    %c0_i32_0 = arith.constant 0 : i32
    return %c0_i32, %arg0 : i32, i32
  }
}

</mosaic_0001>

<bundles_post_ra>
// kernel: tpu_custom_call.1
= control target key start
LH: loop header
LB: loop body
LE: loop exit
PB: predicated region body
PF: predicated region fallthrough
CT: control target
= control target key end

     0   :  { %12 = vsyncpa [#allocation3], 0  ;;  %s465_s0 = inlined_call_operand.hbm [shape: f32[8,16], index: 0, kind: input, shape index: {}]   ;;  %s466_s1 = inlined_call_operand.hbm [shape: f32[16,64], index: 1, kind: input, shape index: {}]   ;;  %s467_s2 = inlined_call_operand.vmem [shape: f32[1,64], index: 2, kind: input, shape index: {}]   ;;  %s468_s3 = inlined_call_operand.hbm [shape: f32[64,64], index: 3, kind: input, shape index: {}]   ;;  %s469_s4 = inlined_call_operand.vmem [shape: f32[1,64], index: 4, kind: input, shape index: {}]   ;;  %s470_s5 = inlined_call_operand.hbm [shape: f32[64,128], index: 5, kind: input, shape index: {}]   ;;  %s471_s6 = inlined_call_operand.vmem [shape: f32[1,128], index: 6, kind: input, shape index: {}]   ;;  %s472_s7 = inlined_call_operand.hbm [shape: f32[3,8], index: 7, kind: output, shape index: {}]  }
   0x1   :  { %13 = vsyncpa [#allocation6], 0 }
   0x2   :  { %14 = vsyncpa [#allocation9], 0  ;;  %s31_s26 = sshll.u32 %s466_s1, 4  ;;  %s32_s26 = int_to_ptr.hbm [resolvable:$true] %s31_s26 }
   0x3   :  { %15 = vsyncpa [#allocation4], 0  ;;  %s394_s27 = smov [#allocation5]   ;;  %s21_s8 = sshll.u32 %s465_s0, 4  ;;  %s22_s8 = int_to_ptr.hbm [resolvable:$true] %s21_s8 }
   0x4   :  { %s33_s28 = sshll.u32 %s394_s27, 4  ;;  %s395_s9 = smov 128   ;;  %s34_s28 = int_to_ptr.vmem [resolvable:$true] %s33_s28 }
   0x5   :  { %s396_s10 = smov 8   ;;  %s397_s11 = smov [#allocation2]  }
   0x6   :  { %39 = dma.hbm_to_vmem [thread:$0]  %s32_s26, 256, %s34_s28, [#allocation6], %s395_s9, %s395_s9, %s396_s10  }
   0x7   :  { %s23_s12 = sshll.u32 %s397_s11, 4  ;;  %s46_s15 = sshll.u32 %s468_s3, 4  ;;  %s24_s12 = int_to_ptr.vmem [resolvable:$true] %s23_s12  ;;  %s47_s15 = int_to_ptr.hbm [resolvable:$true] %s46_s15 }
   0x8   :  { %26 = dma.hbm_to_vmem [thread:$0]  %s22_s8, 128, %s24_s12, [#allocation3]  }
   0x9   :  { %s61_s17 = sshll.u32 %s470_s5, 4  ;;  %s398_s18 = smov [#allocation7]   ;;  %s62_s17 = int_to_ptr.hbm [resolvable:$true] %s61_s17 }
   0xa   :  { %s48_s19 = sshll.u32 %s398_s18, 4  ;;  %s399_s0 = smov [#allocation8]   ;;  %s49_s19 = int_to_ptr.vmem [resolvable:$true] %s48_s19 }
   0xb   :  { %54 = dma.hbm_to_vmem [thread:$0]  %s47_s15, 1024, %s49_s19, [#allocation6], %s395_s9, %s395_s9, %s396_s10  }
   0xc   :  { %s63_s20 = sshll.u32 %s399_s0, 4  ;;  %s64_s20 = int_to_ptr.vmem [resolvable:$true] %s63_s20 }
   0xd   :  { %69 = dma.hbm_to_vmem [thread:$0]  %s62_s17, 1024, %s64_s20, [#allocation9], %s395_s9, %s395_s9, %s396_s10  }
   0xe   :  { %386 = dma.done.wait [#allocation3], 128  }
   0xf   :  { %387 = vsyncadd [#allocation3], 4294967168 }
  0x10   :  { %388 = dma.done.wait [#allocation6], 1280  }
  0x11   :  { %389 = vsyncadd [#allocation6], 4294966016 }
  0x12   :  { %390 = dma.done.wait [#allocation9], 1024  }
  0x13   :  { %391 = vsyncadd [#allocation9], 4294966272  ;;  %v90_v0 = vld [vmem:[#allocation5 + $0x8] sm:$0xff]  ;;  %v89_v1 = vld [vmem:[#allocation5] sm:$0xff]  ;;  %vm95_vm0 = vcmask 130048   ;;  %vm132_vm1 = vcmask 523264   ;;  %v224_v30 = vlaneseq }
  0x14   :  { %113 = vmatpush.msra.mxu0 %v90_v0  ;;  %v88_v2 = vld [vmem:[#allocation2] sm:$0xff]  ;;  %v127_v3 = vld [vmem:[#allocation7 + $0x38] sm:$0xff]  ;;  %v126_v4 = vld [vmem:[#allocation7 + $0x30] sm:$0xff]  ;;  %s400_s24 = smov [#allocation10]   ;;  %s239_s28 = sshll.u32 %s472_s7, 4  ;;  %vm230_vm3 = vcmask 59392   ;;  %s240_s28 = int_to_ptr.hbm [resolvable:$true] %s239_s28 }
  0x15   :  { %144 = vmatpush.msra.mxu1 %v127_v3  ;;  %v125_v5 = vld [vmem:[#allocation7 + $0x28] sm:$0xff]  ;;  %v124_v6 = vld [vmem:[#allocation7 + $0x20] sm:$0xff]  ;;  %v123_v7 = vld [vmem:[#allocation7 + $0x18] sm:$0xff]  ;;  %v225_v31 = vshrl.u32 %v224_v30, 7  ;;  %s237_s25 = sshll.u32 %s400_s24, 4  ;;  %s238_s25 = int_to_ptr.vmem [resolvable:$true] %s237_s25 }
  0x16   :  { %114 = vmatpush.msra.mxu0 %v89_v1  ;;  %v122_v8 = vld [vmem:[#allocation7 + $0x10] sm:$0xff]  ;;  %v121_v9 = vld [vmem:[#allocation7 + $0x8] sm:$0xff]  ;;  %v120_v10 = vld [vmem:[#allocation7] sm:$0xff] }
  0x17   :  { %251 = vmatmul.msk.f32.vlgmr.msra.gmra.mxu0 %vm95_vm0, %v88_v2  ;;  %145 = vmatpush.msra.mxu1 %v126_v4  ;;  %v164_v11 = vld [vmem:[#allocation8 + $0x38] sm:$0xff]  ;;  %v163_v12 = vld [vmem:[#allocation8 + $0x30] sm:$0xff]  ;;  %v162_v13 = vld [vmem:[#allocation8 + $0x28] sm:$0xff]  ;;  %vm228_vm2 = vcmp.lt.s32.totalorder %v225_v31, 2 }
  0x18   :  { %180 = vmatpush.msra.mxu2 %v164_v11  ;;  %v161_v14 = vld [vmem:[#allocation8 + $0x20] sm:$0xff]  ;;  %v160_v15 = vld [vmem:[#allocation8 + $0x18] sm:$0xff]  ;;  %v263_v16 = vld [vmem:[%s467_s2] ss:$0 sm:$0xff] }
  0x19   :  { %146 = vmatpush.msra.mxu1 %v125_v5  ;;  %v159_v20 = vld [vmem:[#allocation8 + $0x10] sm:$0xff]  ;;  %v158_v21 = vld [vmem:[#allocation8 + $0x8] sm:$0xff]  ;;  %v157_v22 = vld [vmem:[#allocation8] sm:$0xff] }
  0x1a   :  { %181 = vmatpush.msra.mxu2 %v163_v12  ;;  %v264_v23 = vld [vmem:[%s469_s4] ss:$0 sm:$0xff] }
  0x1b   :  { %147 = vmatpush.msra.mxu1 %v124_v6  ;;  %v265_v27 = vld [vmem:[%s471_s6] ss:$0 sm:$0xff] }
  0x1c   :  { %182 = vmatpush.msra.mxu2 %v162_v13 }
  0x1d   :  { %148 = vmatpush.msra.mxu1 %v123_v7 }
  0x1e   :  { %183 = vmatpush.msra.mxu2 %v161_v14 }
  0x1f   :  { %149 = vmatpush.msra.mxu1 %v122_v8 }
  0x20   :  { %184 = vmatpush.msra.mxu2 %v160_v15 }
  0x21   :  { %150 = vmatpush.msra.mxu1 %v121_v9 }
  0x22   :  { %185 = vmatpush.msra.mxu2 %v159_v20 }
  0x23   :  { %151 = vmatpush.msra.mxu1 %v120_v10 }
  0x24   :  { %186 = vmatpush.msra.mxu2 %v158_v21 }
  0x26   :  { %187 = vmatpush.msra.mxu2 %v157_v22 }
  0x94   :  { %v116_v17 = vpop.f32.mrf.mxu0 }
  0x95   :  { %v117_v18 = vadd.f32 %v263_v16, %v116_v17 }
  0x97   :  { %v119_v19 = vmax.f32 %v117_v18, 0.0 }
  0x99   :  { %252 = vmatmul.msk.f32.vlgmr.msra.gmra.mxu1 %vm132_vm1, %v119_v19 }
 0x116   :  { %v153_v24 = vpop.f32.mrf.mxu1 }
 0x117   :  { %v154_v25 = vadd.f32 %v264_v23, %v153_v24 }
 0x119   :  { %v156_v26 = vmax.f32 %v154_v25, 0.0 }
 0x11b   :  { %253 = vmatmul.msk.f32.vlgmr.msra.gmra.mxu2 %vm132_vm1, %v156_v26 }
 0x19e   :  { %v189_v28 = vpop.f32.mrf.mxu2 }
 0x19f   :  { %v190_v29 = vadd.f32 %v265_v27, %v189_v28 }
 0x1a1   :  { %192 = vxpose.xlu0.b32.start.end [1/1] (short) (narrow) %v190_v29, 8 }
 0x245   :  { %v208_v32 = vpop.trf.xlu0 }
 0x246   :  { %v254_v33 = vclamps-f32 %v208_v32, 20.0 }
 0x248   :  { %v229_v34 = vsel %vm228_vm2, %v254_v33, %v208_v32 }
 0x249   :  { %231 = vst.msk [vmem:[#allocation10] sm:$0x7] %vm230_vm3, %v229_v34 }
 0x24a   :  { %242 = dma.vmem_to_hbm [thread:$0]  %s238_s25, 64, %s240_s28, [#allocation4]  }
 0x24b   :  { %392 = dma.done.wait [#allocation4], 64  }
 0x24c   :  { %393 = vsyncadd [#allocation4], 4294967232 }
 0x24d   :  { %247 = vsyncpa [#allocation3], 1 }
 0x24e   :  { %248 = vsyncpa [#allocation6], 1 }
 0x24f   :  { %249 = vsyncpa [#allocation9], 1 }
 0x250   :  { %250 = vsyncpa [#allocation4], 1 }

</bundles_post_ra>
